<compile_context>
chip_gen: v7x
topology: tpu7x:2x2x1
jax: 0.10.0
libtpu: 0.0.40
codegen_flags: <defaults>
</compile_context>

<pallas_src>
import jax
import jax.numpy as jnp
from jax.experimental import pallas as pl
from jax.experimental.pallas import tpu as pltpu

_MIB = 1024 * 1024


def _round_up(x, m):
    return (x + m - 1) // m * m


def _vmem_capacity_bytes():
    """Physical VMEM of the attached TPU; conservative 64 MiB (v7x) fallback."""
    try:
        return int(pltpu.get_tpu_info().vmem_capacity_bytes)
    except Exception:
        return 64 * _MIB


def _pick_tm(n, d, x_itemsize, *, vmem_cap, tm_cap=8192, n_x_buffers=3):
    """Row tile size.

    Picks the biggest tile whose *total* pipelined VMEM footprint
    (n_x_buffers x lane-padded x tile + 2 x lane-padded (tm,1) out tile +
    (tm,16)->(tm,128) f32 intermediates + resident weights) fits a
    generation-aware budget, then caps it so the grid keeps >= 2 steps whenever
    the batch is big enough to matter (keeps both v7x TensorCores busy).
    """
    # bf16 packs 16 rows per sublane group -> 16-row alignment; f32 -> 8.
    mult = 16 if (x_itemsize == 2 and n >= 16) else 8

    padded_d = _round_up(max(d, 1), 128)
    per_row = (
        n_x_buffers * padded_d * x_itemsize  # streamed x buffers
        + 2 * 128 * 4                        # (tm,1) f32 out block pads to (tm,128), double-buffered
        + 2 * 128 * 4                        # (tm,16) f32 h / ReLU intermediates pad to (tm,128)
    )
    # Resident (constant-index) blocks: w1 pads to (round_up(D,8),128) f32 + small bias/w2 tiles.
    resident = _round_up(max(d, 8), 8) * 128 * 4 + 4 * 8 * 128 * 4

    budget = min(vmem_cap // 2, 40 * _MIB) - resident - 2 * _MIB  # slack for internal scratch
    tm = min(tm_cap, max(mult, budget // per_row))

    if n * padded_d * x_itemsize >= 2 * _MIB:
        # Non-trivial batch: guarantee >= 2 grid steps so ("parallel",) can
        # megacore-shard and the BlockSpec pipeline has steps to overlap.
        tm = min(tm, _round_up(-(-n // 2), mult))
    else:
        # Tiny batch: one step, tile no bigger than the (mult-aligned) batch.
        tm = min(tm, max(mult, (n // mult) * mult))

    return max(mult, (tm // mult) * mult)


def _mlp_kernel(x_ref, w1_ref, b1_ref, w2_ref, b2_ref, o_ref):
    # Layer 1 on the MXU, f32 accumulation (native bf16 MXU path when x/w1 are bf16).
    h = jnp.dot(x_ref[...], w1_ref[...], preferred_element_type=jnp.float32)  # (tm, 16)
    h = jnp.maximum(h + b1_ref[...], 0.0)                                     # bias + ReLU (VPU)
    # Layer 2 (16 -> 1): VPU multiply + XLU lane reduce; keeps the MXU off the
    # store path (a 1-output-column matmul would waste the systolic array).
    y = jnp.sum(h * w2_ref[...], axis=-1, keepdims=True) + b2_ref[...]        # (tm, 1) f32
    o_ref[...] = y.astype(o_ref.dtype)


def _build_call(N, D, H, tm, vmem_limit, cost, input_buffering):
    x_spec_kwargs = {}
    if input_buffering is not None:
        x_spec_kwargs["pipeline_mode"] = pl.Buffered(input_buffering)
    return pl.pallas_call(
        _mlp_kernel,
        out_shape=jax.ShapeDtypeStruct((N, 1), jnp.float32),
        grid_spec=pltpu.PrefetchScalarGridSpec(
            num_scalar_prefetch=0,
            grid=(pl.cdiv(N, tm),),
            in_specs=[
                # x tile: the only per-step HBM stream (triple-buffered when
                # the grid has >= 2 steps to hide DMA turnaround jitter).
                pl.BlockSpec((tm, D), lambda i: (i, 0), **x_spec_kwargs),
                # Weights/biases: constant block index -> fetched once and
                # resident in VMEM across the whole grid.
                pl.BlockSpec((D, H), lambda i: (0, 0)),
                pl.BlockSpec((1, H), lambda i: (0, 0)),
                pl.BlockSpec((1, H), lambda i: (0, 0)),
                pl.BlockSpec((1, 1), lambda i: (0, 0)),
            ],
            # TODO(synk): lane-densify the width-1 output (write (1, tm) slabs
            # via an in-kernel transpose) if profiling shows the masked
            # writeback matters; its lane padding is already budgeted in _pick_tm.
            out_specs=pl.BlockSpec((tm, 1), lambda i: (i, 0)),
        ),
        compiler_params=pltpu.CompilerParams(
            # Rows are independent -> megacore-shard the grid (2 TCs on v7x).
            dimension_semantics=("parallel",),
            vmem_limit_bytes=vmem_limit,
        ),
        cost_estimate=cost,
    )


def link_predictor_forward(x, w1, b1, w2, b2, *, tm=None):
    """x: (N, D). w1: (D, 16), b1: (16,), w2: (16, 1), b2: (1,). Returns (N, 1) f32."""
    N, D = x.shape
    H = w1.shape[1]
    x_itemsize = jnp.dtype(x.dtype).itemsize
    vmem_cap = _vmem_capacity_bytes()
    if tm is None:
        tm = _pick_tm(N, D, x_itemsize, vmem_cap=vmem_cap)
    assert tm % 8 == 0 and tm >= 8, "row tile must be a positive multiple of 8"

    num_steps = pl.cdiv(N, tm)

    # Match the streamed-input dtype on w1 so the MXU stays on the native
    # low-precision path; everything after the f32 accumulation stays f32.
    w1c = w1.astype(x.dtype)
    b1_2d = b1.reshape(1, H).astype(jnp.float32)
    w2_row = w2.reshape(1, H).astype(jnp.float32)  # (16, 1) -> (1, 16) row for the VPU epilogue
    b2_2d = b2.reshape(1, 1).astype(jnp.float32)

    weight_bytes = D * H * x_itemsize + (2 * H + 1) * 4
    cost = pl.CostEstimate(
        flops=2 * N * H * (D + 2),
        transcendentals=0,
        bytes_accessed=N * D * x_itemsize + N * 4 + weight_bytes,
    )

    # 3/4 of physical VMEM (capped at 96 MiB): covers the footprint picked in
    # _pick_tm while leaving headroom (esp. on v7x's 64 MiB physical).
    vmem_limit = int(min(vmem_cap * 3 // 4, 96 * _MIB))

    args = (x, w1c, b1_2d, w2_row, b2_2d)
    buffering = 3 if num_steps >= 2 else None
    try:
        return _build_call(N, D, H, tm, vmem_limit, cost, buffering)(*args)
    except Exception:
        if buffering is None:
            raise
        # pipeline_mode not supported here: fall back to default double buffering.
        return _build_call(N, D, H, tm, vmem_limit, cost, None)(*args)


def init_params(key, input_dim, hidden=16):
    """Deterministic init mimicking torch.nn.Linear (uniform +/- 1/sqrt(fan_in))."""
    k1, k2, k3, k4 = jax.random.split(key, 4)
    lim1 = 1.0 / jnp.sqrt(jnp.float32(input_dim))
    lim2 = 1.0 / jnp.sqrt(jnp.float32(hidden))
    w1 = jax.random.uniform(k1, (input_dim, hidden), jnp.float32, -lim1, lim1)
    b1 = jax.random.uniform(k2, (hidden,), jnp.float32, -lim1, lim1)
    w2 = jax.random.uniform(k3, (hidden, 1), jnp.float32, -lim2, lim2)
    b2 = jax.random.uniform(k4, (1,), jnp.float32, -lim2, lim2)
    return w1, b1, w2, b2


def _ref(x, w1, b1, w2, b2):
    xf = x.astype(jnp.float32)
    return jnp.maximum(xf @ w1 + b1, 0.0) @ w2 + b2


if __name__ == "__main__":
    key = jax.random.PRNGKey(0)
    kx, kp, kx2, kx3, kx4 = jax.random.split(key, 5)

    # Small shapes consistent with the module: batch=8, input_dim=32.
    N, D = 8, 32
    x = jax.random.normal(kx, (N, D), dtype=jnp.float32)
    w1, b1, w2, b2 = init_params(kp, D)

    out = jax.block_until_ready(link_predictor_forward(x, w1, b1, w2, b2))
    assert out.shape == (N, 1)
    assert jnp.allclose(out, _ref(x, w1, b1, w2, b2), atol=1e-5, rtol=1e-5)

    # Ragged batch with an explicit tiny tile: exercises the partial tail block
    # (OOB reads discarded garbage, OOB writes dropped by Pallas).
    N2 = 20
    x2 = jax.random.normal(kx2, (N2, D), dtype=jnp.float32)
    out2 = jax.block_until_ready(link_predictor_forward(x2, w1, b1, w2, b2, tm=8))
    assert out2.shape == (N2, 1)
    assert jnp.allclose(out2, _ref(x2, w1, b1, w2, b2), atol=1e-5, rtol=1e-5)

    # Larger ragged batch with auto-picked tile: exercises the >=2-step grid
    # (megacore sharding on v7x) and the Buffered(3) x stream.
    N3, D3 = 4100, 128
    x3 = jax.random.normal(kx3, (N3, D3), dtype=jnp.float32)
    w1b, b1b, w2b, b2b = init_params(kp, D3)
    out3 = jax.block_until_ready(link_predictor_forward(x3, w1b, b1b, w2b, b2b))
    assert out3.shape == (N3, 1)
    assert jnp.allclose(out3, _ref(x3, w1b, b1b, w2b, b2b), atol=1e-4, rtol=1e-4)

    # bf16 streamed input: wrapper casts w1 to bf16 (native MXU path), f32 output.
    N4 = 32
    x4 = jax.random.normal(kx4, (N4, D3), dtype=jnp.float32).astype(jnp.bfloat16)
    out4 = jax.block_until_ready(link_predictor_forward(x4, w1b, b1b, w2b, b2b))
    assert out4.shape == (N4, 1) and out4.dtype == jnp.float32
    assert jnp.allclose(out4, _ref(x4, w1b, b1b, w2b, b2b), atol=5e-2, rtol=5e-2)

    print("KERNEL_OK")
</pallas_src>

<mosaic_0001>
module attributes {stable_mosaic.version = 11 : i64} {
  func.func @_mlp_kernel(%arg0: i32, %arg1: memref<8x32xf32, #tpu.memory_space<vmem>>, %arg2: memref<32x16xf32, #tpu.memory_space<vmem>>, %arg3: memref<1x16xf32, #tpu.memory_space<vmem>>, %arg4: memref<1x16xf32, #tpu.memory_space<vmem>>, %arg5: memref<1x1xf32, #tpu.memory_space<vmem>>, %arg6: memref<8x1xf32, #tpu.memory_space<vmem>>) attributes {dimension_semantics = [#tpu.dimension_semantics<parallel>], iteration_bounds = array<i64: 1>, scalar_prefetch = 0 : i64, scratch_operands = 0 : i64, tpu.core_type = #tpu.core_type<tc>, window_params = [{transform_indices = @transform_0, window_bounds = array<i64: 8, 32>}, {pipeline_mode = #tpu.pipeline_mode<synchronous>, transform_indices = @transform_1, window_bounds = array<i64: 32, 16>}, {pipeline_mode = #tpu.pipeline_mode<synchronous>, transform_indices = @transform_2, window_bounds = array<i64: 1, 16>}, {pipeline_mode = #tpu.pipeline_mode<synchronous>, transform_indices = @transform_3, window_bounds = array<i64: 1, 16>}, {pipeline_mode = #tpu.pipeline_mode<synchronous>, transform_indices = @transform_4, window_bounds = array<i64: 1, 1>}, {transform_indices = @transform_5, window_bounds = array<i64: 8, 1>}]} {
    %c0 = arith.constant 0 : index
    %c0_0 = arith.constant 0 : index
    %0 = vector.load %arg1[%c0, %c0_0] : memref<8x32xf32, #tpu.memory_space<vmem>>, vector<8x32xf32>
    %c0_1 = arith.constant 0 : index
    %c0_2 = arith.constant 0 : index
    %1 = vector.load %arg2[%c0_1, %c0_2] : memref<32x16xf32, #tpu.memory_space<vmem>>, vector<32x16xf32>
    %cst = arith.constant dense<0.000000e+00> : vector<8x16xf32>
    %2 = tpu.matmul %0, %1, %cst {dimension_numbers = #tpu.dot_dimension_numbers<[1], [0], [0], [1], [0, 0, 1, 1], [], []>} : vector<8x32xf32>, vector<32x16xf32>, vector<8x16xf32> -> vector<8x16xf32>
    %c0_3 = arith.constant 0 : index
    %c0_4 = arith.constant 0 : index
    %3 = vector.load %arg3[%c0_3, %c0_4] : memref<1x16xf32, #tpu.memory_space<vmem>>, vector<1x16xf32>
    %4 = vector.broadcast %3 : vector<1x16xf32> to vector<8x16xf32>
    %5 = arith.addf %2, %4 : vector<8x16xf32>
    %cst_5 = arith.constant 0.000000e+00 : f32
    %6 = vector.broadcast %cst_5 : f32 to vector<8x16xf32>
    %7 = arith.maximumf %5, %6 : vector<8x16xf32>
    %c0_6 = arith.constant 0 : index
    %c0_7 = arith.constant 0 : index
    %8 = vector.load %arg4[%c0_6, %c0_7] : memref<1x16xf32, #tpu.memory_space<vmem>>, vector<1x16xf32>
    %9 = vector.broadcast %8 : vector<1x16xf32> to vector<8x16xf32>
    %10 = arith.mulf %7, %9 : vector<8x16xf32>
    %cst_8 = arith.constant dense<0.000000e+00> : vector<8xf32>
    %11 = vector.multi_reduction <add>, %10, %cst_8 [1] : vector<8x16xf32> to vector<8xf32>
    %12 = vector.shape_cast %11 : vector<8xf32> to vector<8x1xf32>
    %c0_9 = arith.constant 0 : index
    %c0_10 = arith.constant 0 : index
    %13 = vector.load %arg5[%c0_9, %c0_10] : memref<1x1xf32, #tpu.memory_space<vmem>>, vector<1x1xf32>
    %14 = vector.broadcast %13 : vector<1x1xf32> to vector<8x1xf32>
    %15 = arith.addf %12, %14 : vector<8x1xf32>
    %c0_11 = arith.constant 0 : index
    %c0_12 = arith.constant 0 : index
    %16 = vector.load %arg6[%c0_11, %c0_12] : memref<8x1xf32, #tpu.memory_space<vmem>>, vector<8x1xf32>
    tpu.vector_store %arg6[%c0_11, %c0_12], %15 {strides = array<i32>} : memref<8x1xf32, #tpu.memory_space<vmem>>, vector<8x1xf32>,
    return
  }
  func.func @transform_0(%arg0: i32) -> (i32, i32) {
    %c0_i32 = arith.constant 0 : i32
    %c0_i32_0 = arith.constant 0 : i32
    return %arg0, %c0_i32 : i32, i32
  }
  func.func @transform_1(%arg0: i32) -> (i32, i32) {
    %c0_i32 = arith.constant 0 : i32
    %c0_i32_0 = arith.constant 0 : i32
    %c0_i32_1 = arith.constant 0 : i32
    return %c0_i32, %c0_i32_0 : i32, i32
  }
  func.func @transform_2(%arg0: i32) -> (i32, i32) {
    %c0_i32 = arith.constant 0 : i32
    %c0_i32_0 = arith.constant 0 : i32
    %c0_i32_1 = arith.constant 0 : i32
    return %c0_i32, %c0_i32_0 : i32, i32
  }
  func.func @transform_3(%arg0: i32) -> (i32, i32) {
    %c0_i32 = arith.constant 0 : i32
    %c0_i32_0 = arith.constant 0 : i32
    %c0_i32_1 = arith.constant 0 : i32
    return %c0_i32, %c0_i32_0 : i32, i32
  }
  func.func @transform_4(%arg0: i32) -> (i32, i32) {
    %c0_i32 = arith.constant 0 : i32
    %c0_i32_0 = arith.constant 0 : i32
    %c0_i32_1 = arith.constant 0 : i32
    return %c0_i32, %c0_i32_0 : i32, i32
  }
  func.func @transform_5(%arg0: i32) -> (i32, i32) {
    %c0_i32 = arith.constant 0 : i32
    %c0_i32_0 = arith.constant 0 : i32
    return %arg0, %c0_i32 : i32, i32
  }
}

</mosaic_0001>

<bundles_post_ra>
// kernel: tpu_custom_call.1
= control target key start
LH: loop header
LB: loop body
LE: loop exit
PB: predicated region body
PF: predicated region fallthrough
CT: control target
= control target key end

     0   :  { %v164_v0 = vmov 0.0|0.0   ;;  %vm165_vm0 = vmmov 0   ;;  %v166_v4 = vmov 0.0   ;;  %vm34_vm1 = vcmask 261120   ;;  %s224_s1 = inlined_call_operand.vmem [shape: f32[32,16], index: 1, kind: input, shape index: {}]   ;;  %s225_s0 = inlined_call_operand.vmem [shape: f32[8,32], index: 0, kind: input, shape index: {}]   ;;  %s226_s4 = inlined_call_operand.<no memory space> [shape: f32[1,1], index: 4, kind: input, shape index: {}]   ;;  %s227_s2 = inlined_call_operand.vmem [shape: f32[1,16], index: 2, kind: input, shape index: {}]   ;;  %s228_s3 = inlined_call_operand.vmem [shape: f32[1,16], index: 3, kind: input, shape index: {}]   ;;  %s229_s5 = inlined_call_operand.vmem [shape: f32[8,1], index: 5, kind: output, shape index: {}]  }
   0x1   :  { %155 = vmatprep.subr.bf16.mxu0 %v164_v0  ;;  %v23_v1 = vld [vmem:[%s224_s1] sm:$0xff]  ;;  %v24_v2 = vld [vmem:[%s224_s1 + $0x8] sm:$0xff]  ;;  %v25_v3 = vld [vmem:[%s224_s1 + $0x10] sm:$0xff]  ;;  %152 = vmatprep.mubr.msk.f32.mxu0 %vm165_vm0, %v166_v4  ;;  %v10_v9 = vstv %s226_s4  ;;  %vm117_vm2 = vcmask 130048   ;;  %vm129_vm3 = vcmask 7168  }
   0x2   :  { %v156_v5 = vpack.c.bf16 %v24_v2, %v23_v1  ;;  %v26_v6 = vld [vmem:[%s224_s1 + $0x18] sm:$0xff]  ;;  %v22_v8 = vld [vmem:[%s225_s0] sm:$0xff]  ;;  %11 = vst [vmem:[#allocation2] sm:$0x1] %v10_v9 }
   0x3   :  { %v159_v7 = vpack.c.bf16 %v26_v6, %v25_v3  ;;  %v135_v10 = vld [vmem:[%s227_s2] ss:$0 sm:$0xff] }
   0x4   :  { %157 = vmatpush3.bf16.msra.mxu0 %v156_v5  ;;  %v137_v14 = vld [vmem:[%s228_s3] ss:$0 sm:$0xff] }
   0x5   :  { %158 = vmatprep.subr.bf16.mxu0 %v164_v0 }
   0x8   :  { %160 = vmatpush3.bf16.msra.mxu0 %v159_v7 }
   0x9   :  { %v138_v18 = vld [vmem:[#allocation2] ss:$0 sm:$0xff] }
   0xb   :  { %153 = vmatmul.mubr.msk.f32.vlgmr.msra.gmra.mrb[0].mxu0 %vm34_vm1, %v22_v8 }
  0xde   :  { %v104_v11 = vpop.f32.mrb[0].mxu0 }
  0xdf   :  { %v105_v12 = vadd.f32 %v135_v10, %v104_v11  ;;  %v154_v13 = vpop.f32.mrb[1].mxu0 }
  0xe1   :  { %v108_v15 = vmax.f32 %v105_v12, 0.0 }
  0xe3   :  { %v116_v16 = vmul.f32 %v137_v14, %v108_v15 }
  0xe5   :  { %v118_v17 = vsel %vm117_vm2, %v116_v16, 0.0 }
  0xe6   :  { %119 = vadd.xlane.f32.xlu0 %v118_v17 }
 0x173   :  { %v120_v19 = vpop.xlane.xlu0 %119 }
 0x174   :  { %v128_v20 = vadd.f32 %v138_v18, %v120_v19 }
 0x176   :  { %130 = vst.msk [vmem:[%s229_s5] sm:$0xff] %vm129_vm3, %v128_v20 }

</bundles_post_ra>
